<compile_context>
chip_gen: v7x
topology: tpu7x:2x2x1
jax: 0.10.0
libtpu: 0.0.40
codegen_flags: <defaults>
</compile_context>

<pallas_src>
import functools

import jax
import jax.numpy as jnp
import numpy as np
from jax.experimental import pallas as pl
from jax.experimental.pallas import tpu as pltpu


def _char_decoder_kernel(x_ref, h0_ref, c0_ref, wih_ref, whh_ref, b_ref,
                         wout_ref, bout_ref,
                         scores_ref, hout_ref, cout_ref,
                         hs_sc, *, seq_len, batch, hidden_size):
    """Single-invocation LSTM + projection.

    x_ref      : (L*B, E)   time-major embedded inputs
    h0/c0_ref  : (B, H)     initial LSTM state
    wih_ref    : (E, 4H)    W_ih^T
    whh_ref    : (H, 4H)    W_hh^T
    b_ref      : (1, 4H)    b_ih + b_hh
    wout_ref   : (H, V)     W_out^T
    bout_ref   : (1, V)     b_out
    scores_ref : (L*B, V)   output scores
    hout/cout  : (B, H)     final LSTM state
    hs_sc      : (L*B, H)   VMEM scratch collecting h_t for the deferred projection
    """
    B = batch
    H = hidden_size

    # --- Hoisted input projection for ALL time steps (one MXU matmul) -------
    # (L*B, E) @ (E, 4H) + bias  ->  (L*B, 4H), PyTorch gate order [i, f, g, o].
    xg = (jnp.dot(x_ref[...], wih_ref[...], preferred_element_type=jnp.float32)
          + b_ref[...])

    whh = whh_ref[...]          # keep W_hh^T resident as a value across the loop
    h = h0_ref[...]             # (B, H)
    c = c0_ref[...]             # (B, H)

    # --- Sequential recurrence, fully unrolled (L is small & static) --------
    for t in range(seq_len):
        gates = xg[t * B:(t + 1) * B, :] + jnp.dot(
            h, whh, preferred_element_type=jnp.float32)      # (B, 4H)

        i_g = jax.nn.sigmoid(gates[:, 0 * H:1 * H])
        f_g = jax.nn.sigmoid(gates[:, 1 * H:2 * H])
        g_g = jnp.tanh(gates[:, 2 * H:3 * H])
        o_g = jax.nn.sigmoid(gates[:, 3 * H:4 * H])

        c = f_g * c + i_g * g_g
        h = o_g * jnp.tanh(c)

        hs_sc[t * B:(t + 1) * B, :] = h                      # static-index store

    # Final LSTM state: written exactly once.
    hout_ref[...] = h
    cout_ref[...] = c

    # --- Deferred output projection: one matmul, one lane-dense store -------
    scores_ref[...] = (jnp.dot(hs_sc[...], wout_ref[...],
                               preferred_element_type=jnp.float32)
                       + bout_ref[...])


def char_decoder_forward(char_ids, dec_hidden, params):
    """Pallas implementation of CharDecoder.forward.

    char_ids   : (L, B) int32
    dec_hidden : tuple (h0, c0) each (1, B, H) f32
    returns    : scores (L, B, V) f32, (h_n, c_n) each (1, B, H) f32
    """
    emb_table = params["emb"]          # (V, E), padding row already zeroed
    w_ih = params["w_ih"]              # (4H, E)
    w_hh = params["w_hh"]              # (4H, H)
    b_ih = params["b_ih"]              # (4H,)
    b_hh = params["b_hh"]              # (4H,)
    w_out = params["w_out"]            # (V, H)
    b_out = params["b_out"]            # (V,)

    L, B = char_ids.shape
    V, E = emb_table.shape
    H = w_hh.shape[1]

    # Glue: embedding lookup (padding_idx semantics come from the zeroed row).
    x_emb = jnp.take(emb_table, char_ids, axis=0)            # (L, B, E) f32
    x2d = x_emb.reshape(L * B, E)                            # time-major rows

    h0, c0 = dec_hidden                                      # (1, B, H) each

    wih_t = w_ih.T                                            # (E, 4H)
    whh_t = w_hh.T                                            # (H, 4H)
    bias = (b_ih + b_hh).reshape(1, 4 * H)                    # (1, 4H)
    wout_t = w_out.T                                          # (H, V)
    bout = b_out.reshape(1, V)                                # (1, V)

    kernel = functools.partial(_char_decoder_kernel,
                               seq_len=L, batch=B, hidden_size=H)

    vmem_spec = pl.BlockSpec(memory_space=pltpu.MemorySpace.VMEM)

    scores2d, h_n2d, c_n2d = pl.pallas_call(
        kernel,
        out_shape=(
            jax.ShapeDtypeStruct((L * B, V), jnp.float32),    # scores (flat)
            jax.ShapeDtypeStruct((B, H), jnp.float32),        # h_n
            jax.ShapeDtypeStruct((B, H), jnp.float32),        # c_n
        ),
        in_specs=[vmem_spec] * 8,
        out_specs=(vmem_spec, vmem_spec, vmem_spec),
        scratch_shapes=[
            pltpu.VMEM((L * B, H), jnp.float32),              # h_t collection
        ],
    )(x2d, h0[0], c0[0], wih_t, whh_t, bias, wout_t, bout)

    scores = scores2d.reshape(L, B, V)
    return scores, (h_n2d[None], c_n2d[None])


def char_decoder_forward_ref(char_ids, dec_hidden, params):
    """Pure-JAX reference (matches PyTorch nn.LSTM + nn.Linear semantics)."""
    emb_table = params["emb"]
    w_ih, w_hh = params["w_ih"], params["w_hh"]
    b_ih, b_hh = params["b_ih"], params["b_hh"]
    w_out, b_out = params["w_out"], params["b_out"]
    H = w_hh.shape[1]

    x_emb = jnp.take(emb_table, char_ids, axis=0)             # (L, B, E)
    h0, c0 = dec_hidden
    h, c = h0[0], c0[0]

    def step(carry, x_t):
        h, c = carry
        gates = x_t @ w_ih.T + b_ih + h @ w_hh.T + b_hh
        i_g = jax.nn.sigmoid(gates[:, 0 * H:1 * H])
        f_g = jax.nn.sigmoid(gates[:, 1 * H:2 * H])
        g_g = jnp.tanh(gates[:, 2 * H:3 * H])
        o_g = jax.nn.sigmoid(gates[:, 3 * H:4 * H])
        c_new = f_g * c + i_g * g_g
        h_new = o_g * jnp.tanh(c_new)
        return (h_new, c_new), h_new

    (h_n, c_n), hs = jax.lax.scan(step, (h, c), x_emb)
    scores = hs @ w_out.T + b_out
    return scores, (h_n[None], c_n[None])


def init_params(key, vocab_size, emb_size, hidden_size, pad_idx=0):
    """Deterministic synthetic parameters with the shapes CharDecoder.__init__ implies."""
    ks = jax.random.split(key, 7)
    bound = 1.0 / np.sqrt(hidden_size)
    emb = jax.random.normal(ks[0], (vocab_size, emb_size), jnp.float32) * 0.1
    emb = emb.at[pad_idx].set(0.0)  # padding_idx row is zero
    params = {
        "emb": emb,
        "w_ih": jax.random.uniform(ks[1], (4 * hidden_size, emb_size),
                                   jnp.float32, -bound, bound),
        "w_hh": jax.random.uniform(ks[2], (4 * hidden_size, hidden_size),
                                   jnp.float32, -bound, bound),
        "b_ih": jax.random.uniform(ks[3], (4 * hidden_size,),
                                   jnp.float32, -bound, bound),
        "b_hh": jax.random.uniform(ks[4], (4 * hidden_size,),
                                   jnp.float32, -bound, bound),
        "w_out": jax.random.uniform(ks[5], (vocab_size, hidden_size),
                                    jnp.float32, -bound, bound),
        "b_out": jax.random.uniform(ks[6], (vocab_size,),
                                    jnp.float32, -bound, bound),
    }
    return params


if __name__ == "__main__":
    # Small shapes consistent with CharDecoder.forward:
    #   input (length=8, batch=2), char_embedding_size=50, hidden_size=32, vocab=30
    L, B, E, H, V = 8, 2, 50, 32, 30
    key = jax.random.PRNGKey(0)
    k_par, k_ids, k_h, k_c = jax.random.split(key, 4)

    params = init_params(k_par, V, E, H, pad_idx=0)
    char_ids = jax.random.randint(k_ids, (L, B), 0, V, dtype=jnp.int32)
    h0 = jax.random.normal(k_h, (1, B, H), jnp.float32)
    c0 = jax.random.normal(k_c, (1, B, H), jnp.float32)

    scores, (h_n, c_n) = char_decoder_forward(char_ids, (h0, c0), params)
    jax.block_until_ready((scores, h_n, c_n))

    # Sanity check vs. pure-JAX reference of the PyTorch semantics.
    scores_ref, (h_ref, c_ref) = char_decoder_forward_ref(char_ids, (h0, c0), params)
    assert scores.shape == (L, B, V) and h_n.shape == (1, B, H) and c_n.shape == (1, B, H)
    np.testing.assert_allclose(np.asarray(scores), np.asarray(scores_ref),
                               rtol=1e-5, atol=1e-5)
    np.testing.assert_allclose(np.asarray(h_n), np.asarray(h_ref), rtol=1e-5, atol=1e-5)
    np.testing.assert_allclose(np.asarray(c_n), np.asarray(c_ref), rtol=1e-5, atol=1e-5)

    print("KERNEL_OK")
</pallas_src>

<mosaic_0001>
module attributes {stable_mosaic.version = 11 : i64} {
  func.func @_char_decoder_kernel(%arg0: memref<16x50xf32, #tpu.memory_space<vmem>>, %arg1: memref<2x32xf32, #tpu.memory_space<vmem>>, %arg2: memref<2x32xf32, #tpu.memory_space<vmem>>, %arg3: memref<50x128xf32, #tpu.memory_space<vmem>>, %arg4: memref<32x128xf32, #tpu.memory_space<vmem>>, %arg5: memref<1x128xf32, #tpu.memory_space<vmem>>, %arg6: memref<32x30xf32, #tpu.memory_space<vmem>>, %arg7: memref<1x30xf32, #tpu.memory_space<vmem>>, %arg8: memref<16x30xf32, #tpu.memory_space<vmem>>, %arg9: memref<2x32xf32, #tpu.memory_space<vmem>>, %arg10: memref<2x32xf32, #tpu.memory_space<vmem>>, %arg11: memref<16x32xf32, #tpu.memory_space<vmem>>) attributes {dimension_semantics = [], scalar_prefetch = 0 : i64, scratch_operands = 1 : i64, tpu.core_type = #tpu.core_type<tc>} {
    %c0 = arith.constant 0 : index
    %c0_0 = arith.constant 0 : index
    %0 = vector.load %arg0[%c0, %c0_0] : memref<16x50xf32, #tpu.memory_space<vmem>>, vector<16x50xf32>
    %c0_1 = arith.constant 0 : index
    %c0_2 = arith.constant 0 : index
    %1 = vector.load %arg3[%c0_1, %c0_2] : memref<50x128xf32, #tpu.memory_space<vmem>>, vector<50x128xf32>
    %cst = arith.constant dense<0.000000e+00> : vector<16x128xf32>
    %2 = tpu.matmul %0, %1, %cst {dimension_numbers = #tpu.dot_dimension_numbers<[1], [0], [0], [1], [0, 0, 1, 1], [], []>} : vector<16x50xf32>, vector<50x128xf32>, vector<16x128xf32> -> vector<16x128xf32>
    %c0_3 = arith.constant 0 : index
    %c0_4 = arith.constant 0 : index
    %3 = vector.load %arg5[%c0_3, %c0_4] : memref<1x128xf32, #tpu.memory_space<vmem>>, vector<1x128xf32>
    %4 = vector.broadcast %3 : vector<1x128xf32> to vector<16x128xf32>
    %5 = arith.addf %2, %4 : vector<16x128xf32>
    %c0_5 = arith.constant 0 : index
    %c0_6 = arith.constant 0 : index
    %6 = vector.load %arg4[%c0_5, %c0_6] : memref<32x128xf32, #tpu.memory_space<vmem>>, vector<32x128xf32>
    %c0_7 = arith.constant 0 : index
    %c0_8 = arith.constant 0 : index
    %7 = vector.load %arg1[%c0_7, %c0_8] : memref<2x32xf32, #tpu.memory_space<vmem>>, vector<2x32xf32>
    %c0_9 = arith.constant 0 : index
    %c0_10 = arith.constant 0 : index
    %8 = vector.load %arg2[%c0_9, %c0_10] : memref<2x32xf32, #tpu.memory_space<vmem>>, vector<2x32xf32>
    %9 = vector.extract_strided_slice %5 {offsets = [0, 0], sizes = [2, 128], strides = [1, 1]} : vector<16x128xf32> to vector<2x128xf32>
    %cst_11 = arith.constant dense<0.000000e+00> : vector<2x128xf32>
    %10 = tpu.matmul %7, %6, %cst_11 {dimension_numbers = #tpu.dot_dimension_numbers<[1], [0], [0], [1], [0, 0, 1, 1], [], []>} : vector<2x32xf32>, vector<32x128xf32>, vector<2x128xf32> -> vector<2x128xf32>
    %11 = arith.addf %9, %10 : vector<2x128xf32>
    %12 = vector.extract_strided_slice %11 {offsets = [0, 0], sizes = [2, 32], strides = [1, 1]} : vector<2x128xf32> to vector<2x32xf32>
    %13 = arith.negf %12 : vector<2x32xf32>
    %14 = math.exp %13 : vector<2x32xf32>
    %cst_12 = arith.constant 1.000000e+00 : f32
    %15 = vector.broadcast %cst_12 : f32 to vector<2x32xf32>
    %16 = arith.addf %15, %14 : vector<2x32xf32>
    %17 = arith.divf %15, %16 : vector<2x32xf32>
    %18 = vector.extract_strided_slice %11 {offsets = [0, 32], sizes = [2, 32], strides = [1, 1]} : vector<2x128xf32> to vector<2x32xf32>
    %19 = arith.negf %18 : vector<2x32xf32>
    %20 = math.exp %19 : vector<2x32xf32>
    %cst_13 = arith.constant 1.000000e+00 : f32
    %21 = vector.broadcast %cst_13 : f32 to vector<2x32xf32>
    %22 = arith.addf %21, %20 : vector<2x32xf32>
    %23 = arith.divf %21, %22 : vector<2x32xf32>
    %24 = vector.extract_strided_slice %11 {offsets = [0, 64], sizes = [2, 32], strides = [1, 1]} : vector<2x128xf32> to vector<2x32xf32>
    %25 = math.tanh %24 : vector<2x32xf32>
    %26 = vector.extract_strided_slice %11 {offsets = [0, 96], sizes = [2, 32], strides = [1, 1]} : vector<2x128xf32> to vector<2x32xf32>
    %27 = arith.negf %26 : vector<2x32xf32>
    %28 = math.exp %27 : vector<2x32xf32>
    %cst_14 = arith.constant 1.000000e+00 : f32
    %29 = vector.broadcast %cst_14 : f32 to vector<2x32xf32>
    %30 = arith.addf %29, %28 : vector<2x32xf32>
    %31 = arith.divf %29, %30 : vector<2x32xf32>
    %32 = arith.mulf %23, %8 : vector<2x32xf32>
    %33 = arith.mulf %17, %25 : vector<2x32xf32>
    %34 = arith.addf %32, %33 : vector<2x32xf32>
    %35 = math.tanh %34 : vector<2x32xf32>
    %36 = arith.mulf %31, %35 : vector<2x32xf32>
    %c0_15 = arith.constant 0 : index
    %c0_16 = arith.constant 0 : index
    %37 = vector.load %arg11[%c0_15, %c0_16] : memref<16x32xf32, #tpu.memory_space<vmem>>, vector<2x32xf32>
    tpu.vector_store %arg11[%c0_15, %c0_16], %36 {strides = array<i32>} : memref<16x32xf32, #tpu.memory_space<vmem>>, vector<2x32xf32>,
    %38 = vector.extract_strided_slice %5 {offsets = [2, 0], sizes = [2, 128], strides = [1, 1]} : vector<16x128xf32> to vector<2x128xf32>
    %cst_17 = arith.constant dense<0.000000e+00> : vector<2x128xf32>
    %39 = tpu.matmul %36, %6, %cst_17 {dimension_numbers = #tpu.dot_dimension_numbers<[1], [0], [0], [1], [0, 0, 1, 1], [], []>} : vector<2x32xf32>, vector<32x128xf32>, vector<2x128xf32> -> vector<2x128xf32>
    %40 = arith.addf %38, %39 : vector<2x128xf32>
    %41 = vector.extract_strided_slice %40 {offsets = [0, 0], sizes = [2, 32], strides = [1, 1]} : vector<2x128xf32> to vector<2x32xf32>
    %42 = arith.negf %41 : vector<2x32xf32>
    %43 = math.exp %42 : vector<2x32xf32>
    %cst_18 = arith.constant 1.000000e+00 : f32
    %44 = vector.broadcast %cst_18 : f32 to vector<2x32xf32>
    %45 = arith.addf %44, %43 : vector<2x32xf32>
    %46 = arith.divf %44, %45 : vector<2x32xf32>
    %47 = vector.extract_strided_slice %40 {offsets = [0, 32], sizes = [2, 32], strides = [1, 1]} : vector<2x128xf32> to vector<2x32xf32>
    %48 = arith.negf %47 : vector<2x32xf32>
    %49 = math.exp %48 : vector<2x32xf32>
    %cst_19 = arith.constant 1.000000e+00 : f32
    %50 = vector.broadcast %cst_19 : f32 to vector<2x32xf32>
    %51 = arith.addf %50, %49 : vector<2x32xf32>
    %52 = arith.divf %50, %51 : vector<2x32xf32>
    %53 = vector.extract_strided_slice %40 {offsets = [0, 64], sizes = [2, 32], strides = [1, 1]} : vector<2x128xf32> to vector<2x32xf32>
    %54 = math.tanh %53 : vector<2x32xf32>
    %55 = vector.extract_strided_slice %40 {offsets = [0, 96], sizes = [2, 32], strides = [1, 1]} : vector<2x128xf32> to vector<2x32xf32>
    %56 = arith.negf %55 : vector<2x32xf32>
    %57 = math.exp %56 : vector<2x32xf32>
    %cst_20 = arith.constant 1.000000e+00 : f32
    %58 = vector.broadcast %cst_20 : f32 to vector<2x32xf32>
    %59 = arith.addf %58, %57 : vector<2x32xf32>
    %60 = arith.divf %58, %59 : vector<2x32xf32>
    %61 = arith.mulf %52, %34 : vector<2x32xf32>
    %62 = arith.mulf %46, %54 : vector<2x32xf32>
    %63 = arith.addf %61, %62 : vector<2x32xf32>
    %64 = math.tanh %63 : vector<2x32xf32>
    %65 = arith.mulf %60, %64 : vector<2x32xf32>
    %c2 = arith.constant 2 : index
    %c0_21 = arith.constant 0 : index
    %66 = vector.load %arg11[%c2, %c0_21] : memref<16x32xf32, #tpu.memory_space<vmem>>, vector<2x32xf32>
    tpu.vector_store %arg11[%c2, %c0_21], %65 {strides = array<i32>} : memref<16x32xf32, #tpu.memory_space<vmem>>, vector<2x32xf32>,
    %67 = vector.extract_strided_slice %5 {offsets = [4, 0], sizes = [2, 128], strides = [1, 1]} : vector<16x128xf32> to vector<2x128xf32>
    %cst_22 = arith.constant dense<0.000000e+00> : vector<2x128xf32>
    %68 = tpu.matmul %65, %6, %cst_22 {dimension_numbers = #tpu.dot_dimension_numbers<[1], [0], [0], [1], [0, 0, 1, 1], [], []>} : vector<2x32xf32>, vector<32x128xf32>, vector<2x128xf32> -> vector<2x128xf32>
    %69 = arith.addf %67, %68 : vector<2x128xf32>
    %70 = vector.extract_strided_slice %69 {offsets = [0, 0], sizes = [2, 32], strides = [1, 1]} : vector<2x128xf32> to vector<2x32xf32>
    %71 = arith.negf %70 : vector<2x32xf32>
    %72 = math.exp %71 : vector<2x32xf32>
    %cst_23 = arith.constant 1.000000e+00 : f32
    %73 = vector.broadcast %cst_23 : f32 to vector<2x32xf32>
    %74 = arith.addf %73, %72 : vector<2x32xf32>
    %75 = arith.divf %73, %74 : vector<2x32xf32>
    %76 = vector.extract_strided_slice %69 {offsets = [0, 32], sizes = [2, 32], strides = [1, 1]} : vector<2x128xf32> to vector<2x32xf32>
    %77 = arith.negf %76 : vector<2x32xf32>
    %78 = math.exp %77 : vector<2x32xf32>
    %cst_24 = arith.constant 1.000000e+00 : f32
    %79 = vector.broadcast %cst_24 : f32 to vector<2x32xf32>
    %80 = arith.addf %79, %78 : vector<2x32xf32>
    %81 = arith.divf %79, %80 : vector<2x32xf32>
    %82 = vector.extract_strided_slice %69 {offsets = [0, 64], sizes = [2, 32], strides = [1, 1]} : vector<2x128xf32> to vector<2x32xf32>
    %83 = math.tanh %82 : vector<2x32xf32>
    %84 = vector.extract_strided_slice %69 {offsets = [0, 96], sizes = [2, 32], strides = [1, 1]} : vector<2x128xf32> to vector<2x32xf32>
    %85 = arith.negf %84 : vector<2x32xf32>
    %86 = math.exp %85 : vector<2x32xf32>
    %cst_25 = arith.constant 1.000000e+00 : f32
    %87 = vector.broadcast %cst_25 : f32 to vector<2x32xf32>
    %88 = arith.addf %87, %86 : vector<2x32xf32>
    %89 = arith.divf %87, %88 : vector<2x32xf32>
    %90 = arith.mulf %81, %63 : vector<2x32xf32>
    %91 = arith.mulf %75, %83 : vector<2x32xf32>
    %92 = arith.addf %90, %91 : vector<2x32xf32>
    %93 = math.tanh %92 : vector<2x32xf32>
    %94 = arith.mulf %89, %93 : vector<2x32xf32>
    %c4 = arith.constant 4 : index
    %c0_26 = arith.constant 0 : index
    %95 = vector.load %arg11[%c4, %c0_26] : memref<16x32xf32, #tpu.memory_space<vmem>>, vector<2x32xf32>
    tpu.vector_store %arg11[%c4, %c0_26], %94 {strides = array<i32>} : memref<16x32xf32, #tpu.memory_space<vmem>>, vector<2x32xf32>,
    %96 = vector.extract_strided_slice %5 {offsets = [6, 0], sizes = [2, 128], strides = [1, 1]} : vector<16x128xf32> to vector<2x128xf32>
    %cst_27 = arith.constant dense<0.000000e+00> : vector<2x128xf32>
    %97 = tpu.matmul %94, %6, %cst_27 {dimension_numbers = #tpu.dot_dimension_numbers<[1], [0], [0], [1], [0, 0, 1, 1], [], []>} : vector<2x32xf32>, vector<32x128xf32>, vector<2x128xf32> -> vector<2x128xf32>
    %98 = arith.addf %96, %97 : vector<2x128xf32>
    %99 = vector.extract_strided_slice %98 {offsets = [0, 0], sizes = [2, 32], strides = [1, 1]} : vector<2x128xf32> to vector<2x32xf32>
    %100 = arith.negf %99 : vector<2x32xf32>
    %101 = math.exp %100 : vector<2x32xf32>
    %cst_28 = arith.constant 1.000000e+00 : f32
    %102 = vector.broadcast %cst_28 : f32 to vector<2x32xf32>
    %103 = arith.addf %102, %101 : vector<2x32xf32>
    %104 = arith.divf %102, %103 : vector<2x32xf32>
    %105 = vector.extract_strided_slice %98 {offsets = [0, 32], sizes = [2, 32], strides = [1, 1]} : vector<2x128xf32> to vector<2x32xf32>
    %106 = arith.negf %105 : vector<2x32xf32>
    %107 = math.exp %106 : vector<2x32xf32>
    %cst_29 = arith.constant 1.000000e+00 : f32
    %108 = vector.broadcast %cst_29 : f32 to vector<2x32xf32>
    %109 = arith.addf %108, %107 : vector<2x32xf32>
    %110 = arith.divf %108, %109 : vector<2x32xf32>
    %111 = vector.extract_strided_slice %98 {offsets = [0, 64], sizes = [2, 32], strides = [1, 1]} : vector<2x128xf32> to vector<2x32xf32>
    %112 = math.tanh %111 : vector<2x32xf32>
    %113 = vector.extract_strided_slice %98 {offsets = [0, 96], sizes = [2, 32], strides = [1, 1]} : vector<2x128xf32> to vector<2x32xf32>
    %114 = arith.negf %113 : vector<2x32xf32>
    %115 = math.exp %114 : vector<2x32xf32>
    %cst_30 = arith.constant 1.000000e+00 : f32
    %116 = vector.broadcast %cst_30 : f32 to vector<2x32xf32>
    %117 = arith.addf %116, %115 : vector<2x32xf32>
    %118 = arith.divf %116, %117 : vector<2x32xf32>
    %119 = arith.mulf %110, %92 : vector<2x32xf32>
    %120 = arith.mulf %104, %112 : vector<2x32xf32>
    %121 = arith.addf %119, %120 : vector<2x32xf32>
    %122 = math.tanh %121 : vector<2x32xf32>
    %123 = arith.mulf %118, %122 : vector<2x32xf32>
    %c6 = arith.constant 6 : index
    %c0_31 = arith.constant 0 : index
    %124 = vector.load %arg11[%c6, %c0_31] : memref<16x32xf32, #tpu.memory_space<vmem>>, vector<2x32xf32>
    tpu.vector_store %arg11[%c6, %c0_31], %123 {strides = array<i32>} : memref<16x32xf32, #tpu.memory_space<vmem>>, vector<2x32xf32>,
    %125 = vector.extract_strided_slice %5 {offsets = [8, 0], sizes = [2, 128], strides = [1, 1]} : vector<16x128xf32> to vector<2x128xf32>
    %cst_32 = arith.constant dense<0.000000e+00> : vector<2x128xf32>
    %126 = tpu.matmul %123, %6, %cst_32 {dimension_numbers = #tpu.dot_dimension_numbers<[1], [0], [0], [1], [0, 0, 1, 1], [], []>} : vector<2x32xf32>, vector<32x128xf32>, vector<2x128xf32> -> vector<2x128xf32>
    %127 = arith.addf %125, %126 : vector<2x128xf32>
    %128 = vector.extract_strided_slice %127 {offsets = [0, 0], sizes = [2, 32], strides = [1, 1]} : vector<2x128xf32> to vector<2x32xf32>
    %129 = arith.negf %128 : vector<2x32xf32>
    %130 = math.exp %129 : vector<2x32xf32>
    %cst_33 = arith.constant 1.000000e+00 : f32
    %131 = vector.broadcast %cst_33 : f32 to vector<2x32xf32>
    %132 = arith.addf %131, %130 : vector<2x32xf32>
    %133 = arith.divf %131, %132 : vector<2x32xf32>
    %134 = vector.extract_strided_slice %127 {offsets = [0, 32], sizes = [2, 32], strides = [1, 1]} : vector<2x128xf32> to vector<2x32xf32>
    %135 = arith.negf %134 : vector<2x32xf32>
    %136 = math.exp %135 : vector<2x32xf32>
    %cst_34 = arith.constant 1.000000e+00 : f32
    %137 = vector.broadcast %cst_34 : f32 to vector<2x32xf32>
    %138 = arith.addf %137, %136 : vector<2x32xf32>
    %139 = arith.divf %137, %138 : vector<2x32xf32>
    %140 = vector.extract_strided_slice %127 {offsets = [0, 64], sizes = [2, 32], strides = [1, 1]} : vector<2x128xf32> to vector<2x32xf32>
    %141 = math.tanh %140 : vector<2x32xf32>
    %142 = vector.extract_strided_slice %127 {offsets = [0, 96], sizes = [2, 32], strides = [1, 1]} : vector<2x128xf32> to vector<2x32xf32>
    %143 = arith.negf %142 : vector<2x32xf32>
    %144 = math.exp %143 : vector<2x32xf32>
    %cst_35 = arith.constant 1.000000e+00 : f32
    %145 = vector.broadcast %cst_35 : f32 to vector<2x32xf32>
    %146 = arith.addf %145, %144 : vector<2x32xf32>
    %147 = arith.divf %145, %146 : vector<2x32xf32>
    %148 = arith.mulf %139, %121 : vector<2x32xf32>
    %149 = arith.mulf %133, %141 : vector<2x32xf32>
    %150 = arith.addf %148, %149 : vector<2x32xf32>
    %151 = math.tanh %150 : vector<2x32xf32>
    %152 = arith.mulf %147, %151 : vector<2x32xf32>
    %c8 = arith.constant 8 : index
    %c0_36 = arith.constant 0 : index
    %153 = vector.load %arg11[%c8, %c0_36] : memref<16x32xf32, #tpu.memory_space<vmem>>, vector<2x32xf32>
    tpu.vector_store %arg11[%c8, %c0_36], %152 {strides = array<i32>} : memref<16x32xf32, #tpu.memory_space<vmem>>, vector<2x32xf32>,
    %154 = vector.extract_strided_slice %5 {offsets = [10, 0], sizes = [2, 128], strides = [1, 1]} : vector<16x128xf32> to vector<2x128xf32>
    %cst_37 = arith.constant dense<0.000000e+00> : vector<2x128xf32>
    %155 = tpu.matmul %152, %6, %cst_37 {dimension_numbers = #tpu.dot_dimension_numbers<[1], [0], [0], [1], [0, 0, 1, 1], [], []>} : vector<2x32xf32>, vector<32x128xf32>, vector<2x128xf32> -> vector<2x128xf32>
    %156 = arith.addf %154, %155 : vector<2x128xf32>
    %157 = vector.extract_strided_slice %156 {offsets = [0, 0], sizes = [2, 32], strides = [1, 1]} : vector<2x128xf32> to vector<2x32xf32>
    %158 = arith.negf %157 : vector<2x32xf32>
    %159 = math.exp %158 : vector<2x32xf32>
    %cst_38 = arith.constant 1.000000e+00 : f32
    %160 = vector.broadcast %cst_38 : f32 to vector<2x32xf32>
    %161 = arith.addf %160, %159 : vector<2x32xf32>
    %162 = arith.divf %160, %161 : vector<2x32xf32>
    %163 = vector.extract_strided_slice %156 {offsets = [0, 32], sizes = [2, 32], strides = [1, 1]} : vector<2x128xf32> to vector<2x32xf32>
    %164 = arith.negf %163 : vector<2x32xf32>
    %165 = math.exp %164 : vector<2x32xf32>
    %cst_39 = arith.constant 1.000000e+00 : f32
    %166 = vector.broadcast %cst_39 : f32 to vector<2x32xf32>
    %167 = arith.addf %166, %165 : vector<2x32xf32>
    %168 = arith.divf %166, %167 : vector<2x32xf32>
    %169 = vector.extract_strided_slice %156 {offsets = [0, 64], sizes = [2, 32], strides = [1, 1]} : vector<2x128xf32> to vector<2x32xf32>
    %170 = math.tanh %169 : vector<2x32xf32>
    %171 = vector.extract_strided_slice %156 {offsets = [0, 96], sizes = [2, 32], strides = [1, 1]} : vector<2x128xf32> to vector<2x32xf32>
    %172 = arith.negf %171 : vector<2x32xf32>
    %173 = math.exp %172 : vector<2x32xf32>
    %cst_40 = arith.constant 1.000000e+00 : f32
    %174 = vector.broadcast %cst_40 : f32 to vector<2x32xf32>
    %175 = arith.addf %174, %173 : vector<2x32xf32>
    %176 = arith.divf %174, %175 : vector<2x32xf32>
    %177 = arith.mulf %168, %150 : vector<2x32xf32>
    %178 = arith.mulf %162, %170 : vector<2x32xf32>
    %179 = arith.addf %177, %178 : vector<2x32xf32>
    %180 = math.tanh %179 : vector<2x32xf32>
    %181 = arith.mulf %176, %180 : vector<2x32xf32>
    %c10 = arith.constant 10 : index
    %c0_41 = arith.constant 0 : index
    %182 = vector.load %arg11[%c10, %c0_41] : memref<16x32xf32, #tpu.memory_space<vmem>>, vector<2x32xf32>
    tpu.vector_store %arg11[%c10, %c0_41], %181 {strides = array<i32>} : memref<16x32xf32, #tpu.memory_space<vmem>>, vector<2x32xf32>,
    %183 = vector.extract_strided_slice %5 {offsets = [12, 0], sizes = [2, 128], strides = [1, 1]} : vector<16x128xf32> to vector<2x128xf32>
    %cst_42 = arith.constant dense<0.000000e+00> : vector<2x128xf32>
    %184 = tpu.matmul %181, %6, %cst_42 {dimension_numbers = #tpu.dot_dimension_numbers<[1], [0], [0], [1], [0, 0, 1, 1], [], []>} : vector<2x32xf32>, vector<32x128xf32>, vector<2x128xf32> -> vector<2x128xf32>
    %185 = arith.addf %183, %184 : vector<2x128xf32>
    %186 = vector.extract_strided_slice %185 {offsets = [0, 0], sizes = [2, 32], strides = [1, 1]} : vector<2x128xf32> to vector<2x32xf32>
    %187 = arith.negf %186 : vector<2x32xf32>
    %188 = math.exp %187 : vector<2x32xf32>
    %cst_43 = arith.constant 1.000000e+00 : f32
    %189 = vector.broadcast %cst_43 : f32 to vector<2x32xf32>
    %190 = arith.addf %189, %188 : vector<2x32xf32>
    %191 = arith.divf %189, %190 : vector<2x32xf32>
    %192 = vector.extract_strided_slice %185 {offsets = [0, 32], sizes = [2, 32], strides = [1, 1]} : vector<2x128xf32> to vector<2x32xf32>
    %193 = arith.negf %192 : vector<2x32xf32>
    %194 = math.exp %193 : vector<2x32xf32>
    %cst_44 = arith.constant 1.000000e+00 : f32
    %195 = vector.broadcast %cst_44 : f32 to vector<2x32xf32>
    %196 = arith.addf %195, %194 : vector<2x32xf32>
    %197 = arith.divf %195, %196 : vector<2x32xf32>
    %198 = vector.extract_strided_slice %185 {offsets = [0, 64], sizes = [2, 32], strides = [1, 1]} : vector<2x128xf32> to vector<2x32xf32>
    %199 = math.tanh %198 : vector<2x32xf32>
    %200 = vector.extract_strided_slice %185 {offsets = [0, 96], sizes = [2, 32], strides = [1, 1]} : vector<2x128xf32> to vector<2x32xf32>
    %201 = arith.negf %200 : vector<2x32xf32>
    %202 = math.exp %201 : vector<2x32xf32>
    %cst_45 = arith.constant 1.000000e+00 : f32
    %203 = vector.broadcast %cst_45 : f32 to vector<2x32xf32>
    %204 = arith.addf %203, %202 : vector<2x32xf32>
    %205 = arith.divf %203, %204 : vector<2x32xf32>
    %206 = arith.mulf %197, %179 : vector<2x32xf32>
    %207 = arith.mulf %191, %199 : vector<2x32xf32>
    %208 = arith.addf %206, %207 : vector<2x32xf32>
    %209 = math.tanh %208 : vector<2x32xf32>
    %210 = arith.mulf %205, %209 : vector<2x32xf32>
    %c12 = arith.constant 12 : index
    %c0_46 = arith.constant 0 : index
    %211 = vector.load %arg11[%c12, %c0_46] : memref<16x32xf32, #tpu.memory_space<vmem>>, vector<2x32xf32>
    tpu.vector_store %arg11[%c12, %c0_46], %210 {strides = array<i32>} : memref<16x32xf32, #tpu.memory_space<vmem>>, vector<2x32xf32>,
    %212 = vector.extract_strided_slice %5 {offsets = [14, 0], sizes = [2, 128], strides = [1, 1]} : vector<16x128xf32> to vector<2x128xf32>
    %cst_47 = arith.constant dense<0.000000e+00> : vector<2x128xf32>
    %213 = tpu.matmul %210, %6, %cst_47 {dimension_numbers = #tpu.dot_dimension_numbers<[1], [0], [0], [1], [0, 0, 1, 1], [], []>} : vector<2x32xf32>, vector<32x128xf32>, vector<2x128xf32> -> vector<2x128xf32>
    %214 = arith.addf %212, %213 : vector<2x128xf32>
    %215 = vector.extract_strided_slice %214 {offsets = [0, 0], sizes = [2, 32], strides = [1, 1]} : vector<2x128xf32> to vector<2x32xf32>
    %216 = arith.negf %215 : vector<2x32xf32>
    %217 = math.exp %216 : vector<2x32xf32>
    %cst_48 = arith.constant 1.000000e+00 : f32
    %218 = vector.broadcast %cst_48 : f32 to vector<2x32xf32>
    %219 = arith.addf %218, %217 : vector<2x32xf32>
    %220 = arith.divf %218, %219 : vector<2x32xf32>
    %221 = vector.extract_strided_slice %214 {offsets = [0, 32], sizes = [2, 32], strides = [1, 1]} : vector<2x128xf32> to vector<2x32xf32>
    %222 = arith.negf %221 : vector<2x32xf32>
    %223 = math.exp %222 : vector<2x32xf32>
    %cst_49 = arith.constant 1.000000e+00 : f32
    %224 = vector.broadcast %cst_49 : f32 to vector<2x32xf32>
    %225 = arith.addf %224, %223 : vector<2x32xf32>
    %226 = arith.divf %224, %225 : vector<2x32xf32>
    %227 = vector.extract_strided_slice %214 {offsets = [0, 64], sizes = [2, 32], strides = [1, 1]} : vector<2x128xf32> to vector<2x32xf32>
    %228 = math.tanh %227 : vector<2x32xf32>
    %229 = vector.extract_strided_slice %214 {offsets = [0, 96], sizes = [2, 32], strides = [1, 1]} : vector<2x128xf32> to vector<2x32xf32>
    %230 = arith.negf %229 : vector<2x32xf32>
    %231 = math.exp %230 : vector<2x32xf32>
    %cst_50 = arith.constant 1.000000e+00 : f32
    %232 = vector.broadcast %cst_50 : f32 to vector<2x32xf32>
    %233 = arith.addf %232, %231 : vector<2x32xf32>
    %234 = arith.divf %232, %233 : vector<2x32xf32>
    %235 = arith.mulf %226, %208 : vector<2x32xf32>
    %236 = arith.mulf %220, %228 : vector<2x32xf32>
    %237 = arith.addf %235, %236 : vector<2x32xf32>
    %238 = math.tanh %237 : vector<2x32xf32>
    %239 = arith.mulf %234, %238 : vector<2x32xf32>
    %c14 = arith.constant 14 : index
    %c0_51 = arith.constant 0 : index
    %240 = vector.load %arg11[%c14, %c0_51] : memref<16x32xf32, #tpu.memory_space<vmem>>, vector<2x32xf32>
    tpu.vector_store %arg11[%c14, %c0_51], %239 {strides = array<i32>} : memref<16x32xf32, #tpu.memory_space<vmem>>, vector<2x32xf32>,
    %c0_52 = arith.constant 0 : index
    %c0_53 = arith.constant 0 : index
    %241 = vector.load %arg9[%c0_52, %c0_53] : memref<2x32xf32, #tpu.memory_space<vmem>>, vector<2x32xf32>
    tpu.vector_store %arg9[%c0_52, %c0_53], %239 {strides = array<i32>} : memref<2x32xf32, #tpu.memory_space<vmem>>, vector<2x32xf32>,
    %c0_54 = arith.constant 0 : index
    %c0_55 = arith.constant 0 : index
    %242 = vector.load %arg10[%c0_54, %c0_55] : memref<2x32xf32, #tpu.memory_space<vmem>>, vector<2x32xf32>
    tpu.vector_store %arg10[%c0_54, %c0_55], %237 {strides = array<i32>} : memref<2x32xf32, #tpu.memory_space<vmem>>, vector<2x32xf32>,
    %c0_56 = arith.constant 0 : index
    %c0_57 = arith.constant 0 : index
    %243 = vector.load %arg11[%c0_56, %c0_57] : memref<16x32xf32, #tpu.memory_space<vmem>>, vector<16x32xf32>
    %c0_58 = arith.constant 0 : index
    %c0_59 = arith.constant 0 : index
    %244 = vector.load %arg6[%c0_58, %c0_59] : memref<32x30xf32, #tpu.memory_space<vmem>>, vector<32x30xf32>
    %cst_60 = arith.constant dense<0.000000e+00> : vector<16x30xf32>
    %245 = tpu.matmul %243, %244, %cst_60 {dimension_numbers = #tpu.dot_dimension_numbers<[1], [0], [0], [1], [0, 0, 1, 1], [], []>} : vector<16x32xf32>, vector<32x30xf32>, vector<16x30xf32> -> vector<16x30xf32>
    %c0_61 = arith.constant 0 : index
    %c0_62 = arith.constant 0 : index
    %246 = vector.load %arg7[%c0_61, %c0_62] : memref<1x30xf32, #tpu.memory_space<vmem>>, vector<1x30xf32>
    %247 = vector.broadcast %246 : vector<1x30xf32> to vector<16x30xf32>
    %248 = arith.addf %245, %247 : vector<16x30xf32>
    %c0_63 = arith.constant 0 : index
    %c0_64 = arith.constant 0 : index
    %249 = vector.load %arg8[%c0_63, %c0_64] : memref<16x30xf32, #tpu.memory_space<vmem>>, vector<16x30xf32>
    tpu.vector_store %arg8[%c0_63, %c0_64], %248 {strides = array<i32>} : memref<16x30xf32, #tpu.memory_space<vmem>>, vector<16x30xf32>,
    return
  }
}

</mosaic_0001>

<bundles_post_ra>
// kernel: tpu_custom_call.1
= control target key start
LH: loop header
LB: loop body
LE: loop exit
PB: predicated region body
PF: predicated region fallthrough
CT: control target
= control target key end

     0   :  { %16 = vsyncpa [#allocation4], 0  ;;  %s2066_s0 = inlined_call_operand.hbm [shape: f32[16,50], index: 0, kind: input, shape index: {}]   ;;  %s2067_s1 = inlined_call_operand.vmem [shape: f32[2,32], index: 1, kind: input, shape index: {}]   ;;  %s2068_s2 = inlined_call_operand.vmem [shape: f32[2,32], index: 2, kind: input, shape index: {}]   ;;  %s2069_s3 = inlined_call_operand.hbm [shape: f32[50,128], index: 3, kind: input, shape index: {}]   ;;  %s2070_s4 = inlined_call_operand.hbm [shape: f32[32,128], index: 4, kind: input, shape index: {}]   ;;  %s2071_s5 = inlined_call_operand.vmem [shape: f32[1,128], index: 5, kind: input, shape index: {}]   ;;  %s2072_s6 = inlined_call_operand.hbm [shape: f32[32,30], index: 6, kind: input, shape index: {}]   ;;  %s2073_s7 = inlined_call_operand.vmem [shape: f32[1,30], index: 7, kind: input, shape index: {}]   ;;  %s2074_s8 = inlined_call_operand.hbm [shape: f32[16,30], index: 8, kind: output, shape index: {0}]   ;;  %s2075_s9 = inlined_call_operand.hbm [shape: f32[2,32], index: 9, kind: output, shape index: {1}]   ;;  %s2076_s10 = inlined_call_operand.hbm [shape: f32[2,32], index: 10, kind: output, shape index: {2}]  }
   0x1   :  { %17 = vsyncpa [#allocation7], 0 }
   0x2   :  { %18 = vsyncpa [#allocation10], 0 }
   0x3   :  { %19 = vsyncpa [#allocation5], 0 }
   0x4   :  { %20 = vsyncpa [#allocation13], 0  ;;  %s1731_s13 = smov [#allocation6]   ;;  %s1732_s15 = smov [#allocation3]  }
   0x5   :  { %s42_s14 = sshll.u32 %s1731_s13, 4  ;;  %s26_s16 = sshll.u32 %s1732_s15, 4  ;;  %s43_s14 = int_to_ptr.vmem [resolvable:$true] %s42_s14  ;;  %s1801_s16 = int_to_ptr.vmem [resolvable:$true] %s26_s16 }
   0x6   :  { %s1567_s19 = scalar_lea.hbm %s2069_s3, 896 }
   0x7   :  { %p1568_p0 = scmp.ne.s32.totalorder %s2069_s3, %s1567_s19  ;;  %p1571_p1 = scmp.lt.u32.totalorder %s1567_s19, %s2069_s3 }
   0x9   :  { %p1573_p2 = pnand %p1571_p1, %p1568_p0 }
   0xb   :  { %1576 = shalt.err (!%p1573_p2)
}
   0xc   :  { %s1577_s24 = scalar_lea.vmem %s43_s14, 896  ;;  %p1582_p4 = scmp.lt.s32.totalorder %s43_s14, %s43_s14 }
   0xd   :  { %p1578_p3 = scmp.ne.s32.totalorder %s43_s14, %s1577_s24  ;;  %p1583_p5 = scmp.lt.s32.totalorder %s1577_s24, %s1577_s24 }
   0xf   :  { %p1584_p6 = por %p1583_p5, %p1582_p4 }
  0x11   :  { %p1585_p7 = pnand %p1584_p6, %p1578_p3 }
  0x13   :  { %1588 = shalt.err (!%p1585_p7)
}
  0x14   :  { %s1733_s25 = smov 128   ;;  %s1734_s26 = smov 8  }
  0x15   :  { %48 = dma.hbm_to_vmem [thread:$0]  %s2069_s3, 896, %s43_s14, [#allocation7], %s1733_s25, %s1733_s25, %s1734_s26  }
  0x16   :  { %s1589_s11 = scalar_lea.hbm %s2066_s0, 256 }
  0x17   :  { %p1590_p8 = scmp.ne.s32.totalorder %s2066_s0, %s1589_s11  ;;  %p1593_p9 = scmp.lt.u32.totalorder %s1589_s11, %s2066_s0 }
  0x19   :  { %p1595_p10 = pnand %p1593_p9, %p1590_p8 }
  0x1b   :  { %1598 = shalt.err (!%p1595_p10)
}
  0x1c   :  { %s1599_s18 = scalar_lea.vmem %s1801_s16, 256  ;;  %p1604_p12 = scmp.lt.s32.totalorder %s1801_s16, %s1801_s16 }
  0x1d   :  { %p1600_p11 = scmp.ne.s32.totalorder %s1801_s16, %s1599_s18  ;;  %p1605_p13 = scmp.lt.s32.totalorder %s1599_s18, %s1599_s18 }
  0x1f   :  { %p1606_p0 = por %p1605_p13, %p1604_p12 }
  0x21   :  { %p1607_p1 = pnand %p1606_p0, %p1600_p11 }
  0x23   :  { %1610 = shalt.err (!%p1607_p1)
}
  0x24   :  { %32 = dma.hbm_to_vmem [thread:$0]  %s2066_s0, 256, %s1801_s16, [#allocation4], %s1733_s25, %s1733_s25, %s1734_s26  }
  0x25   :  { %s1735_s19 = smov [#allocation8]   ;;  %s1736_s21 = smov [#allocation9]  }
  0x26   :  { %s54_s20 = sshll.u32 %s1735_s19, 4  ;;  %s68_s22 = sshll.u32 %s1736_s21, 4  ;;  %s55_s20 = int_to_ptr.vmem [resolvable:$true] %s54_s20  ;;  %s1838_s22 = int_to_ptr.vmem [resolvable:$true] %s68_s22 }
  0x27   :  { %s1611_s27 = scalar_lea.hbm %s2070_s4, 512 }
  0x28   :  { %p1612_p2 = scmp.ne.s32.totalorder %s2070_s4, %s1611_s27  ;;  %p1615_p3 = scmp.lt.u32.totalorder %s1611_s27, %s2070_s4 }
  0x2a   :  { %p1617_p4 = pnand %p1615_p3, %p1612_p2 }
  0x2c   :  { %1620 = shalt.err (!%p1617_p4)
}
  0x2d   :  { %s1621_s0 = scalar_lea.vmem %s55_s20, 512  ;;  %p1626_p6 = scmp.lt.s32.totalorder %s55_s20, %s55_s20 }
  0x2e   :  { %p1622_p5 = scmp.ne.s32.totalorder %s55_s20, %s1621_s0  ;;  %p1627_p7 = scmp.lt.s32.totalorder %s1621_s0, %s1621_s0 }
  0x30   :  { %p1628_p8 = por %p1627_p7, %p1626_p6 }
  0x32   :  { %p1629_p9 = pnand %p1628_p8, %p1622_p5 }
  0x34   :  { %1632 = shalt.err (!%p1629_p9)
}
  0x35   :  { %60 = dma.hbm_to_vmem [thread:$0]  %s2070_s4, 512, %s55_s20, [#allocation7], %s1733_s25, %s1733_s25, %s1734_s26  }
  0x36   :  { %s1633_s17 = scalar_lea.hbm %s2072_s6, 512 }
  0x37   :  { %p1634_p10 = scmp.ne.s32.totalorder %s2072_s6, %s1633_s17  ;;  %p1637_p11 = scmp.lt.u32.totalorder %s1633_s17, %s2072_s6 }
  0x39   :  { %p1639_p12 = pnand %p1637_p11, %p1634_p10 }
  0x3b   :  { %1642 = shalt.err (!%p1639_p12)
}
  0x3c   :  { %s1643_s21 = scalar_lea.vmem %s1838_s22, 512  ;;  %p1648_p0 = scmp.lt.s32.totalorder %s1838_s22, %s1838_s22 }
  0x3d   :  { %p1644_p13 = scmp.ne.s32.totalorder %s1838_s22, %s1643_s21  ;;  %p1649_p1 = scmp.lt.s32.totalorder %s1643_s21, %s1643_s21 }
  0x3f   :  { %p1650_p2 = por %p1649_p1, %p1648_p0 }
  0x41   :  { %p1651_p3 = pnand %p1650_p2, %p1644_p13 }
  0x43   :  { %1654 = shalt.err (!%p1651_p3)
}
  0x44   :  { %74 = dma.hbm_to_vmem [thread:$0]  %s2072_s6, 512, %s1838_s22, [#allocation10], %s1733_s25, %s1733_s25, %s1734_s26  }
  0x45   :  { %1721 = dma.done.wait [#allocation4], 256  }
  0x46   :  { %1722 = vsyncadd [#allocation4], 4294967040 }
  0x47   :  { %1723 = dma.done.wait [#allocation7], 1408  }
  0x48   :  { %1724 = vsyncadd [#allocation7], 4294965888 }
  0x49   :  { %1725 = dma.done.wait [#allocation10], 512  }
  0x4a   :  { %1726 = vsyncadd [#allocation10], 4294966784  ;;  %v1737_v0 = vmov 0.0|0.0   ;;  %vm1738_vm0 = vmmov 0   ;;  %v1739_v1 = vmov 0.0   ;;  %v91_v2 = vld [vmem:[#allocation6] sm:$0xff] }
  0x4b   :  { %1432 = vmatprep.subr.bf16.mxu1 %v1737_v0  ;;  %1329 = vmatprep.mubr.msk.f32.mxu1 %vm1738_vm0, %v1739_v1  ;;  %v92_v3 = vld [vmem:[#allocation6 + $0x8] sm:$0xff]  ;;  %v93_v4 = vld [vmem:[#allocation6 + $0x10] sm:$0xff]  ;;  %v94_v6 = vld [vmem:[#allocation6 + $0x18] sm:$0xff]  ;;  %vm105_vm1 = vcmask 408576   ;;  %vm197_vm2 = vcmask 261120   ;;  %vm112_vm3 = vcmask 1041408  }
  0x4c   :  { %v1420_v5 = vpack.c.bf16 %v92_v3, %v91_v2  ;;  %v95_v7 = vld [vmem:[#allocation6 + $0x20] sm:$0xff]  ;;  %v1424_v8 = vpack.c.bf16 %v94_v6, %v93_v4  ;;  %v96_v9 = vld [vmem:[#allocation6 + $0x28] sm:$0xff]  ;;  %v191_v10 = vld [vmem:[#allocation8] sm:$0xff]  ;;  %s1740_s24 = smov 64   ;;  %s1741_s29 = smov 32   ;;  %vm304_vm4 = vcmask 254976  }
  0x4d   :  { %v192_v11 = vld [vmem:[#allocation8 + $0x8] sm:$0xff]  ;;  %v89_v13 = vld [vmem:[#allocation3] sm:$0xff]  ;;  %v193_v14 = vld [vmem:[#allocation8 + $0x10] sm:$0xff]  ;;  %v1428_v16 = vpack.c.bf16 %v96_v9, %v95_v7  ;;  %vm413_vm5 = vcmask 257026   ;;  %vm637_vm6 = vcmask 261126   ;;  %vm525_vm7 = vcmask 259076  }
  0x4e   :  { %1421 = vmatprep.subr.bf16.mxu0 %v1420_v5  ;;  %v1878_v12 = vpack.c.bf16 %v192_v11, %v191_v10  ;;  %v194_v15 = vld [vmem:[#allocation8 + $0x18] sm:$0xff]  ;;  %1318 = vmatprep.mubr.msk.f32.mxu0 %vm105_vm1, %v89_v13  ;;  %v195_v18 = vld [vmem:[%s2067_s1] sm:$0x3]  ;;  %v90_v20 = vld [vmem:[#allocation3 + $0x8] sm:$0xff] }
  0x4f   :  { %1423 = vmatpush3.bf16.msra.mxu0 %v1420_v5  ;;  %v1882_v17 = vpack.c.bf16 %v194_v15, %v193_v14  ;;  %v97_v19 = vld [vmem:[#allocation6 + $0x30] sm:$0x3]  ;;  %v1226_v23 = vld [vmem:[%s2071_s5] ss:$0 sm:$0xff]  ;;  %s1743_s5 = smov [#allocation12]  }
  0x50   :  { %1425 = vmatprep.subr.bf16.mxu0 %v1424_v8  ;;  %1434 = vmatpush3.bf16.msra.mxu1 %v1878_v12  ;;  %v196_v30 = vld [vmem:[%s2068_s2] sm:$0x3]  ;;  %s1742_s2 = smov 96   ;;  %s1198_s30 = sshll.u32 %s1743_s5, 4  ;;  %s1199_s30 = int_to_ptr.vmem [resolvable:$true] %s1198_s30 }
  0x51   :  { %1435 = vmatprep.subr.bf16.mxu1 %v1737_v0  ;;  %s1655_s11 = scalar_lea.vmem %s1199_s30, 32  ;;  %p1660_p5 = scmp.lt.s32.totalorder %s1199_s30, %s1199_s30 }
  0x52   :  { %p1656_p4 = scmp.ne.s32.totalorder %s1199_s30, %s1655_s11  ;;  %p1661_p6 = scmp.lt.s32.totalorder %s1655_s11, %s1655_s11 }
  0x53   :  { %1427 = vmatpush3.bf16.msra.mxu0 %v1424_v8 }
  0x54   :  { %1429 = vmatprep.subr.bf16.mxu0 %v1428_v16  ;;  %1437 = vmatpush3.bf16.msra.mxu1 %v1882_v17  ;;  %p1662_p7 = por %p1661_p6, %p1660_p5 }
  0x55   :  { %1438 = vmatprep.subr.bf16.mxu1 %v1737_v0 }
  0x56   :  { %p1663_p8 = pnand %p1662_p7, %p1656_p4 }
  0x57   :  { %1431 = vmatpush3.bf16.msra.mxu0 %v1428_v16  ;;  %1330 = vmatmul.mubr.msk.f32.vlgmr.msra.gmra.mrb[0].mxu1 %vm197_vm2, %v195_v18 }
  0x58   :  { %1316 = vmatprep.subr.msk.mxu0 %vm112_vm3, %v97_v19  ;;  %1440 = vmatpush3.bf16.msra.mxu1 %v1878_v12 }
  0x59   :  { %1441 = vmatprep.subr.bf16.mxu1 %v1737_v0  ;;  %1340 = vmatprep.mubr.msk.f32.mxu1 %vm1738_vm0, %v1739_v1 }
  0x5b   :  { %1317 = vmatpush3.msk.msra.mxu0 %vm112_vm3, %v97_v19 }
  0x5c   :  { %1319 = vmatmul.mubr.msk.f32.vlgmr.msra.gmra.mrb[0].mxu0 %vm105_vm1, %v90_v20  ;;  %1443 = vmatpush3.bf16.msra.mxu1 %v1882_v17 }
  0x5d   :  { %1444 = vmatprep.subr.bf16.mxu0 %v1737_v0  ;;  %1351 = vmatprep.mubr.msk.f32.mxu0 %vm1738_vm0, %v1739_v1 }
  0x5e   :  { %1446 = vmatpush3.bf16.msra.mxu0 %v1878_v12  ;;  %1450 = vmatprep.subr.bf16.mxu1 %v1737_v0 }
  0x5f   :  { %1447 = vmatprep.subr.bf16.mxu0 %v1737_v0 }
  0x62   :  { %1449 = vmatpush3.bf16.msra.mxu0 %v1882_v17 }
  0x63   :  { %1456 = vmatprep.subr.bf16.mxu0 %v1737_v0 }
 0x12a   :  { %v267_v21 = vpop.f32.mrb[0].mxu1 }
 0x12b   :  { %v1331_v22 = vpop.f32.mrb[1].mxu1 }
 0x12f   :  { %v1320_v24 = vpop.f32.mrb[0].mxu0 }
 0x130   :  { %v1908_v25 = vadd.f32 %v1320_v24, %v1226_v23  ;;  %v182_v26 = vpop.f32.mrb[1].mxu0 }
 0x131   :  { %v1910_v27 = vadd.f32 %v1226_v23, %v182_v26 }
 0x133   :  { %v271_v28 = vadd.f32 %v267_v21, %v1910_v27 }
 0x135   :  { %1503 = vtanh.f32 %v271_v28  ;;  %v1231_v31 = vmul.f32 -1.442695, %v271_v28 }
 0x137   :  { %1505 = vpow2.f32 %v1231_v31 }
 0x13f   :  { %v1504_v29 = vpop.eup %1503 }
 0x140   :  { %285 = vrot.lane.b32.xlu0 %v1504_v29, %s1740_s24 }
 0x141   :  { %v1506_v32 = vpop.eup %1505 }
 0x142   :  { %v275_v33 = vadd.f32 1.0, %v1506_v32 }
 0x144   :  { %280 = vrot.lane.b32.xlu0 %v196_v30, %s1741_s29  ;;  %1507 = vrcp.f32 %v275_v33 }
 0x14e   :  { %v1508_v34 = vpop.eup %1507 }
 0x1b2   :  { %v286_v35 = vpop.permute.xlu0 %285 }
 0x1b3   :  { %v288_v36 = vmul.f32 %v1508_v34, %v286_v35 }
 0x1b5   :  { %290 = vrot.lane.b32.xlu1 %v288_v36, %s1741_s29 }
 0x1b6   :  { %v281_v37 = vpop.permute.xlu0 %280 }
 0x1b7   :  { %v283_v38 = vmul.f32 %v1508_v34, %v281_v37 }
 0x227   :  { %v291_v39 = vpop.permute.xlu1 %290 }
 0x228   :  { %v293_v40 = vadd.f32 %v291_v39, %v283_v38 }
 0x22a   :  { %1509 = vtanh.f32 %v293_v40  ;;  %v390_v56 = vrot.slane %v293_v40, 6 }
 0x234   :  { %v1510_v41 = vpop.eup %1509 }
 0x235   :  { %296 = vrot.lane.b32.xlu1 %v1510_v41, %s1740_s24 }
 0x2a7   :  { %v297_v42 = vpop.permute.xlu1 %296 }
 0x2a8   :  { %v299_v43 = vmul.f32 %v1508_v34, %v297_v42 }
 0x2aa   :  { %301 = vrot.lane.b32.xlu0 %v299_v43, %s1741_s29 }
 0x31c   :  { %v302_v44 = vpop.permute.xlu0 %301 }
 0x31d   :  { %305 = vst.msk [vmem:[#allocation2] sm:$0x3] %vm304_vm4, %v302_v44  ;;  %1341 = vmatmul.mubr.msk.f32.vlgmr.msra.gmra.mrb[2].mxu1 %vm197_vm2, %v302_v44 }
 0x31e   :  { %1452 = vmatpush3.bf16.msra.mxu1 %v1878_v12  ;;  %1362 = vmatprep.mubr.msk.f32.mxu1 %vm1738_vm0, %v1739_v1 }
 0x31f   :  { %1453 = vmatprep.subr.bf16.mxu1 %v1737_v0 }
 0x322   :  { %1455 = vmatpush3.bf16.msra.mxu1 %v1882_v17 }
 0x323   :  { %1462 = vmatprep.subr.bf16.mxu1 %v1737_v0 }
 0x3f0   :  { %v374_v45 = vpop.f32.mrb[2].mxu1 }
 0x3f1   :  { %v379_v46 = vrot.slane %v374_v45, 6  ;;  %v1342_v47 = vpop.f32.mrb[3].mxu1 }
 0x3f3   :  { %v381_v48 = vadd.f32 %v379_v46, %v1910_v27 }
 0x3f5   :  { %1511 = vtanh.f32 %v381_v48  ;;  %v1233_v50 = vmul.f32 -1.442695, %v381_v48 }
 0x3f7   :  { %1513 = vpow2.f32 %v1233_v50 }
 0x3ff   :  { %v1512_v49 = vpop.eup %1511 }
 0x400   :  { %394 = vrot.lane.b32.xlu1 %v1512_v49, %s1740_s24 }
 0x401   :  { %v1514_v51 = vpop.eup %1513 }
 0x402   :  { %v385_v52 = vadd.f32 1.0, %v1514_v51 }
 0x404   :  { %1515 = vrcp.f32 %v385_v52 }
 0x40e   :  { %v1516_v53 = vpop.eup %1515 }
 0x40f   :  { %v392_v57 = vmul.f32 %v1516_v53, %v390_v56 }
 0x472   :  { %v395_v54 = vpop.permute.xlu1 %394 }
 0x473   :  { %v397_v55 = vmul.f32 %v1516_v53, %v395_v54 }
 0x475   :  { %399 = vrot.lane.b32.xlu0 %v397_v55, %s1741_s29 }
 0x4e7   :  { %v400_v58 = vpop.permute.xlu0 %399 }
 0x4e8   :  { %v402_v59 = vadd.f32 %v400_v58, %v392_v57 }
 0x4ea   :  { %1517 = vtanh.f32 %v402_v59  ;;  %v502_v15 = vrot.slane %v402_v59, 6 }
 0x4f4   :  { %v1518_v60 = vpop.eup %1517 }
 0x4f5   :  { %405 = vrot.lane.b32.xlu1 %v1518_v60, %s1740_s24 }
 0x567   :  { %v406_v61 = vpop.permute.xlu1 %405 }
 0x568   :  { %v1933_v62 = vmul.f32 %v1516_v53, %v406_v61 }
 0x56a   :  { %v415_v63 = vrot.slane %v1933_v62, 2 }
 0x56c   :  { %416 = vrot.lane.b32.xlu0 %v415_v63, %s1741_s29 }
 0x5de   :  { %v417_v2 = vpop.permute.xlu0 %416 }
 0x5df   :  { %1352 = vmatmul.mubr.msk.f32.vlgmr.msra.gmra.mrb[2].mxu0 %vm197_vm2, %v417_v2 }
 0x5e0   :  { %1458 = vmatpush3.bf16.msra.mxu0 %v1878_v12  ;;  %1373 = vmatprep.mubr.msk.f32.mxu0 %vm1738_vm0, %v1739_v1 }
 0x5e1   :  { %1459 = vmatprep.subr.bf16.mxu0 %v1737_v0 }
 0x5e4   :  { %1461 = vmatpush3.bf16.msra.mxu0 %v1882_v17 }
 0x5e5   :  { %1468 = vmatprep.subr.bf16.mxu0 %v1737_v0 }
 0x6b2   :  { %v486_v3 = vpop.f32.mrb[2].mxu0 }
 0x6b3   :  { %v491_v4 = vrot.slane %v486_v3, 4  ;;  %v1353_v5 = vpop.f32.mrb[3].mxu0 }
 0x6b5   :  { %v493_v6 = vadd.f32 %v491_v4, %v1910_v27 }
 0x6b7   :  { %1519 = vtanh.f32 %v493_v6  ;;  %v1235_v8 = vmul.f32 -1.442695, %v493_v6 }
 0x6b9   :  { %1521 = vpow2.f32 %v1235_v8 }
 0x6c1   :  { %v1520_v7 = vpop.eup %1519 }
 0x6c2   :  { %506 = vrot.lane.b32.xlu1 %v1520_v7, %s1740_s24 }
 0x6c3   :  { %v1522_v9 = vpop.eup %1521 }
 0x6c4   :  { %v497_v10 = vadd.f32 1.0, %v1522_v9 }
 0x6c6   :  { %1523 = vrcp.f32 %v497_v10 }
 0x6d0   :  { %v1524_v11 = vpop.eup %1523 }
 0x6d1   :  { %v504_v16 = vmul.f32 %v1524_v11, %v502_v15 }
 0x734   :  { %v507_v13 = vpop.permute.xlu1 %506 }
 0x735   :  { %v509_v14 = vmul.f32 %v1524_v11, %v507_v13 }
 0x737   :  { %511 = vrot.lane.b32.xlu0 %v509_v14, %s1741_s29 }
 0x7a9   :  { %v512_v18 = vpop.permute.xlu0 %511 }
 0x7aa   :  { %v514_v19 = vadd.f32 %v512_v18, %v504_v16 }
 0x7ac   :  { %1525 = vtanh.f32 %v514_v19  ;;  %v614_v38 = vrot.slane %v514_v19, 6 }
 0x7b6   :  { %v1526_v20 = vpop.eup %1525 }
 0x7b7   :  { %517 = vrot.lane.b32.xlu1 %v1526_v20, %s1740_s24 }
 0x829   :  { %v518_v21 = vpop.permute.xlu1 %517 }
 0x82a   :  { %v1948_v22 = vmul.f32 %v1524_v11, %v518_v21 }
 0x82c   :  { %v527_v23 = vrot.slane %v1948_v22, 4 }
 0x82e   :  { %528 = vrot.lane.b32.xlu0 %v527_v23, %s1741_s29 }
 0x8a0   :  { %v529_v24 = vpop.permute.xlu0 %528 }
 0x8a1   :  { %1363 = vmatmul.mubr.msk.f32.vlgmr.msra.gmra.mrb[4].mxu1 %vm197_vm2, %v529_v24 }
 0x8a2   :  { %1464 = vmatpush3.bf16.msra.mxu1 %v1878_v12  ;;  %1384 = vmatprep.mubr.msk.f32.mxu1 %vm1738_vm0, %v1739_v1 }
 0x8a3   :  { %1465 = vmatprep.subr.bf16.mxu1 %v1737_v0 }
 0x8a6   :  { %1467 = vmatpush3.bf16.msra.mxu1 %v1882_v17 }
 0x8a7   :  { %1474 = vmatprep.subr.bf16.mxu1 %v1737_v0 }
 0x974   :  { %v598_v26 = vpop.f32.mrb[4].mxu1 }
 0x975   :  { %v603_v28 = vrot.slane %v598_v26, 2  ;;  %v1364_v29 = vpop.f32.mrb[5].mxu1 }
 0x977   :  { %v605_v30 = vadd.f32 %v603_v28, %v1910_v27 }
 0x979   :  { %1527 = vtanh.f32 %v605_v30  ;;  %v1237_v32 = vmul.f32 -1.442695, %v605_v30 }
 0x97b   :  { %1529 = vpow2.f32 %v1237_v32 }
 0x983   :  { %v1528_v31 = vpop.eup %1527 }
 0x984   :  { %618 = vrot.lane.b32.xlu1 %v1528_v31, %s1740_s24 }
 0x985   :  { %v1530_v33 = vpop.eup %1529 }
 0x986   :  { %v609_v34 = vadd.f32 1.0, %v1530_v33 }
 0x988   :  { %1531 = vrcp.f32 %v609_v34 }
 0x992   :  { %v1532_v35 = vpop.eup %1531 }
 0x993   :  { %v616_v39 = vmul.f32 %v1532_v35, %v614_v38 }
 0x9f6   :  { %v619_v36 = vpop.permute.xlu1 %618 }
 0x9f7   :  { %v621_v37 = vmul.f32 %v1532_v35, %v619_v36 }
 0x9f9   :  { %623 = vrot.lane.b32.xlu0 %v621_v37, %s1741_s29 }
 0xa6b   :  { %v624_v40 = vpop.permute.xlu0 %623 }
 0xa6c   :  { %v626_v41 = vadd.f32 %v624_v40, %v616_v39 }
 0xa6e   :  { %1533 = vtanh.f32 %v626_v41  ;;  %v723_v56 = vrot.slane %v626_v41, 6 }
 0xa78   :  { %v1534_v27 = vpop.eup %1533 }
 0xa79   :  { %629 = vrot.lane.b32.xlu1 %v1534_v27, %s1740_s24 }
 0xaeb   :  { %v630_v42 = vpop.permute.xlu1 %629 }
 0xaec   :  { %v1963_v43 = vmul.f32 %v1532_v35, %v630_v42 }
 0xaee   :  { %v639_v44 = vrot.slane %v1963_v43, 6 }
 0xaf0   :  { %640 = vrot.lane.b32.xlu0 %v639_v44, %s1741_s29 }
 0xb62   :  { %v641_v45 = vpop.permute.xlu0 %640 }
 0xb63   :  { %1374 = vmatmul.mubr.msk.f32.vlgmr.msra.gmra.mrb[4].mxu0 %vm197_vm2, %v641_v45 }
 0xb64   :  { %1470 = vmatpush3.bf16.msra.mxu0 %v1878_v12  ;;  %1395 = vmatprep.mubr.msk.f32.mxu0 %vm1738_vm0, %v1739_v1 }
 0xb65   :  { %1471 = vmatprep.subr.bf16.mxu0 %v1737_v0 }
 0xb68   :  { %1473 = vmatpush3.bf16.msra.mxu0 %v1882_v17 }
 0xc36   :  { %v710_v46 = vpop.f32.mrb[4].mxu0 }
 0xc37   :  { %v714_v47 = vadd.f32 %v710_v46, %v1908_v25  ;;  %v1375_v48 = vpop.f32.mrb[5].mxu0 }
 0xc39   :  { %1535 = vtanh.f32 %v714_v47  ;;  %v1239_v50 = vmul.f32 -1.442695, %v714_v47 }
 0xc3b   :  { %1537 = vpow2.f32 %v1239_v50 }
 0xc43   :  { %v1536_v49 = vpop.eup %1535 }
 0xc44   :  { %727 = vrot.lane.b32.xlu1 %v1536_v49, %s1740_s24 }
 0xc45   :  { %v1538_v51 = vpop.eup %1537 }
 0xc46   :  { %v718_v52 = vadd.f32 1.0, %v1538_v51 }
 0xc48   :  { %1539 = vrcp.f32 %v718_v52 }
 0xc52   :  { %v1540_v53 = vpop.eup %1539 }
 0xc53   :  { %v725_v57 = vmul.f32 %v1540_v53, %v723_v56 }
 0xcb6   :  { %v728_v54 = vpop.permute.xlu1 %727 }
 0xcb7   :  { %v730_v55 = vmul.f32 %v1540_v53, %v728_v54 }
 0xcb9   :  { %732 = vrot.lane.b32.xlu0 %v730_v55, %s1741_s29 }
 0xd2b   :  { %v733_v58 = vpop.permute.xlu0 %732 }
 0xd2c   :  { %v735_v59 = vadd.f32 %v733_v58, %v725_v57 }
 0xd2e   :  { %1541 = vtanh.f32 %v735_v59 }
 0xd38   :  { %v1542_v60 = vpop.eup %1541 }
 0xd39   :  { %738 = vrot.lane.b32.xlu1 %v1542_v60, %s1740_s24  ;;  %v1085_v60 = vld [vmem:[#allocation9] sm:$0xff] }
 0xdab   :  { %v739_v61 = vpop.permute.xlu1 %738 }
 0xdac   :  { %v741_v63 = vmul.f32 %v1540_v53, %v739_v61  ;;  %v1086_v61 = vld [vmem:[#allocation9 + $0x8] sm:$0xff] }
 0xdae   :  { %743 = vrot.lane.b32.xlu0 %v741_v63, %s1741_s29  ;;  %v1480_v63 = vpack.c.bf16 %v1086_v61, %v1085_v60 }
 0xdb0   :  { %1481 = vmatprep.subr.bf16.mxu0 %v1480_v63 }
 0xe20   :  { %v744_v2 = vpop.permute.xlu0 %743 }
 0xe21   :  { %746 = vst.msk [vmem:[#allocation2 + $0x8] sm:$0x3] %vm304_vm4, %v744_v2  ;;  %1385 = vmatmul.mubr.msk.f32.vlgmr.msra.gmra.mrb[6].mxu1 %vm197_vm2, %v744_v2 }
 0xe22   :  { %1476 = vmatpush3.bf16.msra.mxu1 %v1878_v12  ;;  %1406 = vmatprep.mubr.msk.f32.mxu1 %vm1738_vm0, %v1739_v1 }
 0xe23   :  { %1477 = vmatprep.subr.bf16.mxu1 %v1737_v0  ;;  %v831_v0 = vrot.slane %v735_v59, 6 }
 0xe26   :  { %1479 = vmatpush3.bf16.msra.mxu1 %v1882_v17 }
 0xef4   :  { %v815_v3 = vpop.f32.mrb[6].mxu1 }
 0xef5   :  { %v820_v4 = vrot.slane %v815_v3, 6  ;;  %v1386_v5 = vpop.f32.mrb[7].mxu1  ;;  %v1087_v3 = vld [vmem:[#allocation9 + $0x10] sm:$0xff] }
 0xef7   :  { %v822_v6 = vadd.f32 %v820_v4, %v1908_v25  ;;  %v1088_v4 = vld [vmem:[#allocation9 + $0x18] sm:$0xff] }
 0xef8   :  { %v1484_v5 = vpack.c.bf16 %v1088_v4, %v1087_v3 }
 0xef9   :  { %1543 = vtanh.f32 %v822_v6  ;;  %v1241_v8 = vmul.f32 -1.442695, %v822_v6 }
 0xefb   :  { %1545 = vpow2.f32 %v1241_v8 }
 0xf03   :  { %v1544_v7 = vpop.eup %1543 }
 0xf04   :  { %835 = vrot.lane.b32.xlu1 %v1544_v7, %s1740_s24 }
 0xf05   :  { %v1546_v9 = vpop.eup %1545 }
 0xf06   :  { %v826_v12 = vadd.f32 1.0, %v1546_v9 }
 0xf08   :  { %1547 = vrcp.f32 %v826_v12 }
 0xf12   :  { %v1548_v10 = vpop.eup %1547 }
 0xf13   :  { %v833_v17 = vmul.f32 %v1548_v10, %v831_v0 }
 0xf76   :  { %v836_v1 = vpop.permute.xlu1 %835 }
 0xf77   :  { %v838_v11 = vmul.f32 %v1548_v10, %v836_v1 }
 0xf79   :  { %840 = vrot.lane.b32.xlu0 %v838_v11, %s1741_s29 }
 0xfeb   :  { %v841_v13 = vpop.permute.xlu0 %840 }
 0xfec   :  { %v843_v14 = vadd.f32 %v841_v13, %v833_v17 }
 0xfee   :  { %1549 = vtanh.f32 %v843_v14  ;;  %v942_v35 = vrot.slane %v843_v14, 6 }
 0xff8   :  { %v1550_v15 = vpop.eup %1549 }
 0xff9   :  { %846 = vrot.lane.b32.xlu1 %v1550_v15, %s1740_s24 }
0x106b   :  { %v847_v16 = vpop.permute.xlu1 %846 }
0x106c   :  { %v1989_v18 = vmul.f32 %v1548_v10, %v847_v16 }
0x106e   :  { %v855_v19 = vrot.slane %v1989_v18, 2 }
0x1070   :  { %856 = vrot.lane.b32.xlu0 %v855_v19, %s1741_s29 }
0x10e2   :  { %v857_v20 = vpop.permute.xlu0 %856 }
0x10e3   :  { %1396 = vmatmul.mubr.msk.f32.vlgmr.msra.gmra.mrb[6].mxu0 %vm197_vm2, %v857_v20 }
0x10e4   :  { %1483 = vmatpush3.bf16.msra.mxu0 %v1480_v63 }
0x10e5   :  { %1485 = vmatprep.subr.bf16.mxu0 %v1484_v5 }
0x10e8   :  { %1487 = vmatpush3.bf16.msra.mxu0 %v1484_v5 }
0x11b6   :  { %v926_v21 = vpop.f32.mrb[6].mxu0 }
0x11b7   :  { %v931_v23 = vrot.slane %v926_v21, 4  ;;  %v1397_v24 = vpop.f32.mrb[7].mxu0 }
0x11b9   :  { %v933_v26 = vadd.f32 %v931_v23, %v1908_v25 }
0x11bb   :  { %1551 = vtanh.f32 %v933_v26  ;;  %v1243_v29 = vmul.f32 -1.442695, %v933_v26 }
0x11bd   :  { %1553 = vpow2.f32 %v1243_v29 }
0x11c5   :  { %v1552_v28 = vpop.eup %1551 }
0x11c6   :  { %946 = vrot.lane.b32.xlu1 %v1552_v28, %s1740_s24 }
0x11c7   :  { %v1554_v30 = vpop.eup %1553 }
0x11c8   :  { %v937_v31 = vadd.f32 1.0, %v1554_v30 }
0x11ca   :  { %1555 = vrcp.f32 %v937_v31 }
0x11d4   :  { %v1556_v32 = vpop.eup %1555 }
0x11d5   :  { %v944_v36 = vmul.f32 %v1556_v32, %v942_v35 }
0x1238   :  { %v947_v33 = vpop.permute.xlu1 %946 }
0x1239   :  { %v949_v34 = vmul.f32 %v1556_v32, %v947_v33 }
0x123b   :  { %951 = vrot.lane.b32.xlu0 %v949_v34, %s1741_s29 }
0x12ad   :  { %v952_v37 = vpop.permute.xlu0 %951 }
0x12ae   :  { %v954_v38 = vadd.f32 %v952_v37, %v944_v36 }
0x12b0   :  { %1557 = vtanh.f32 %v954_v38 }
0x12ba   :  { %v1558_v39 = vpop.eup %1557 }
0x12bb   :  { %957 = vrot.lane.b32.xlu1 %v1558_v39, %s1740_s24 }
0x132d   :  { %v958_v40 = vpop.permute.xlu1 %957 }
0x132e   :  { %v960_v41 = vmul.f32 %v1556_v32, %v958_v40 }
0x1330   :  { %v966_v27 = vrot.slane %v960_v41, 4 }
0x1332   :  { %967 = vrot.lane.b32.xlu0 %v966_v27, %s1741_s29 }
0x13a4   :  { %v968_v42 = vpop.permute.xlu0 %967 }
0x13a5   :  { %1407 = vmatmul.mubr.msk.f32.vlgmr.msra.gmra.mrb[8].mxu1 %vm197_vm2, %v968_v42 }
0x1478   :  { %v1037_v44 = vpop.f32.mrb[8].mxu1 }
0x1479   :  { %v1042_v45 = vrot.slane %v1037_v44, 2  ;;  %v1408_v46 = vpop.f32.mrb[9].mxu1 }
0x147b   :  { %v1044_v47 = vadd.f32 %v1042_v45, %v1908_v25  ;;  %v1053_v25 = vrot.slane %v954_v38, 6 }
0x147d   :  { %1559 = vtanh.f32 %v1044_v47  ;;  %v1245_v49 = vmul.f32 -1.442695, %v1044_v47 }
0x147f   :  { %1561 = vpow2.f32 %v1245_v49 }
0x1487   :  { %v1560_v48 = vpop.eup %1559 }
0x1488   :  { %1057 = vrot.lane.b32.xlu1 %v1560_v48, %s1740_s24 }
0x1489   :  { %v1562_v50 = vpop.eup %1561 }
0x148a   :  { %v1048_v51 = vadd.f32 1.0, %v1562_v50 }
0x148c   :  { %1563 = vrcp.f32 %v1048_v51 }
0x1496   :  { %v1564_v52 = vpop.eup %1563 }
0x1497   :  { %v1055_v55 = vmul.f32 %v1564_v52, %v1053_v25 }
0x14fa   :  { %v1058_v53 = vpop.permute.xlu1 %1057 }
0x14fb   :  { %v1060_v54 = vmul.f32 %v1564_v52, %v1058_v53 }
0x14fd   :  { %1062 = vrot.lane.b32.xlu0 %v1060_v54, %s1741_s29 }
0x1501   :  { %410 = vrot.lane.b32.xlu0 %v1933_v62, %s1741_s29 }
0x1505   :  { %634 = vrot.lane.b32.xlu0 %v1963_v43, %s1741_s29 }
0x1509   :  { %962 = vrot.lane.b32.xlu0 %v960_v41, %s1741_s29 }
0x156f   :  { %v1063_v56 = vpop.permute.xlu0 %1062 }
0x1570   :  { %v1065_v57 = vadd.f32 %v1063_v56, %v1055_v55 }
0x1572   :  { %1565 = vtanh.f32 %v1065_v57  ;;  %1079 = vrot.lane.b32.xlu0 %v1065_v57, %s1742_s2 }
0x1573   :  { %v411_v58 = vpop.permute.xlu0 %410 }
0x1574   :  { %414 = vst.msk [vmem:[#allocation2] sm:$0xc] %vm413_vm5, %v411_v58 }
0x1577   :  { %v635_v59 = vpop.permute.xlu0 %634 }
0x1578   :  { %638 = vst.msk [vmem:[#allocation2] sm:$0xc0] %vm637_vm6, %v635_v59 }
0x157b   :  { %v963_v62 = vpop.permute.xlu0 %962 }
0x157c   :  { %v1566_v43 = vpop.eup %1565  ;;  %965 = vst.msk [vmem:[#allocation2 + $0x8] sm:$0x30] %vm525_vm7, %v963_v62 }
0x157d   :  { %1068 = vrot.lane.b32.xlu1 %v1566_v43, %s1740_s24 }
0x1581   :  { %522 = vrot.lane.b32.xlu1 %v1948_v22, %s1741_s29 }
0x1585   :  { %851 = vrot.lane.b32.xlu1 %v1989_v18, %s1741_s29 }
0x15e4   :  { %v1080_v2 = vpop.permute.xlu0 %1079 }
0x15e5   :  { %1082 = vst.msk [vmem:[#allocation14 - $0x6] sm:$0xc0] %vm637_vm6, %v1080_v2 }
0x15ef   :  { %v1069_v6 = vpop.permute.xlu1 %1068 }
0x15f0   :  { %v1071_v7 = vmul.f32 %v1564_v52, %v1069_v6 }
0x15f2   :  { %1073 = vrot.lane.b32.xlu1 %v1071_v7, %s1741_s29 }
0x15f3   :  { %v523_v22 = vpop.permute.xlu1 %522 }
0x15f4   :  { %526 = vst.msk [vmem:[#allocation2] sm:$0x30] %vm525_vm7, %v523_v22 }
0x15f7   :  { %v852_v8 = vpop.permute.xlu1 %851 }
0x15f8   :  { %854 = vst.msk [vmem:[#allocation2 + $0x8] sm:$0xc] %vm413_vm5, %v852_v8 }
0x15fb   :  { %v1083_v9 = vld [vmem:[#allocation2] sm:$0xff] }
0x15fc   :  { %1417 = vmatprep.mubr.msk.f32.mxu0 %vm197_vm2, %v1083_v9 }
0x1664   :  { %v1074_v12 = vpop.permute.xlu1 %1073 }
0x1665   :  { %1076 = vst.msk [vmem:[#allocation2 + $0x8] sm:$0xc0] %vm637_vm6, %v1074_v12  ;;  %1077 = vst.msk [vmem:[#allocation12 - $0x6] sm:$0xc0] %vm637_vm6, %v1074_v12 }
0x166c   :  { %v1084_v10 = vld [vmem:[#allocation2 + $0x8] sm:$0xff] }
0x166d   :  { %1418 = vmatmul.mubr.msk.f32.vlgmr.msra.gmra.mrb[8].mxu0 %vm197_vm2, %v1084_v10 }
0x166e   :  { %1666 = shalt.err (!%p1663_p8)
}
0x166f   :  { %s1667_s12 = scalar_lea.hbm %s2075_s9, 32 }
0x1670   :  { %p1668_p9 = scmp.ne.s32.totalorder %s2075_s9, %s1667_s12  ;;  %p1671_p10 = scmp.lt.u32.totalorder %s1667_s12, %s2075_s9 }
0x1672   :  { %p1673_p11 = pnand %p1671_p10, %p1668_p9 }
0x1674   :  { %1676 = shalt.err (!%p1673_p11)
}
0x1675   :  { %1201 = dma.vmem_to_hbm [thread:$0]  %s1199_s30, 32, %s2075_s9, [#allocation13]  }
0x1676   :  { %s1744_s19 = smov [#allocation14]  }
0x1677   :  { %s1208_s21 = sshll.u32 %s1744_s19, 4  ;;  %s1209_s21 = int_to_ptr.vmem [resolvable:$true] %s1208_s21 }
0x1678   :  { %s1677_s4 = scalar_lea.vmem %s1209_s21, 32  ;;  %p1682_p13 = scmp.lt.s32.totalorder %s1209_s21, %s1209_s21 }
0x1679   :  { %p1678_p12 = scmp.ne.s32.totalorder %s1209_s21, %s1677_s4  ;;  %p1683_p0 = scmp.lt.s32.totalorder %s1677_s4, %s1677_s4 }
0x167b   :  { %p1684_p1 = por %p1683_p0, %p1682_p13 }
0x167d   :  { %p1685_p2 = pnand %p1684_p1, %p1678_p12 }
0x167f   :  { %1688 = shalt.err (!%p1685_p2)
}
0x1680   :  { %s1689_s22 = scalar_lea.hbm %s2076_s10, 32 }
0x1681   :  { %p1690_p3 = scmp.ne.s32.totalorder %s2076_s10, %s1689_s22  ;;  %p1693_p4 = scmp.lt.u32.totalorder %s1689_s22, %s2076_s10 }
0x1683   :  { %p1695_p5 = pnand %p1693_p4, %p1690_p3 }
0x1685   :  { %1698 = shalt.err (!%p1695_p5)
}
0x1686   :  { %1211 = dma.vmem_to_hbm [thread:$0]  %s1209_s21, 32, %s2076_s10, [#allocation13]   ;;  %v1246_v1 = vld [vmem:[%s2073_s7] ss:$0 sm:$0xff]  ;;  %vm1177_vm8 = vcmask 244736  }
0x1687   :  { %s1745_s5 = smov [#allocation11]  }
0x1688   :  { %s1185_s30 = sshll.u32 %s1745_s5, 4  ;;  %s1186_s30 = int_to_ptr.vmem [resolvable:$true] %s1185_s30 }
0x1689   :  { %s1699_s11 = scalar_lea.vmem %s1186_s30, 256  ;;  %p1704_p7 = scmp.lt.s32.totalorder %s1186_s30, %s1186_s30 }
0x168a   :  { %p1700_p6 = scmp.ne.s32.totalorder %s1186_s30, %s1699_s11  ;;  %p1705_p8 = scmp.lt.s32.totalorder %s1699_s11, %s1699_s11 }
0x168c   :  { %p1706_p9 = por %p1705_p8, %p1704_p7 }
0x168e   :  { %p1707_p10 = pnand %p1706_p9, %p1700_p6 }
0x1740   :  { %v1419_v11 = vpop.f32.mrb[8].mxu0 }
0x1741   :  { %v1174_v0 = vadd.f32 %v1419_v11, %v1246_v1  ;;  %v1168_v17 = vpop.f32.mrb[9].mxu0 }
0x1742   :  { %v1169_v13 = vadd.f32 %v1246_v1, %v1168_v17 }
0x1743   :  { %1179 = vst.msk [vmem:[#allocation11 + $0x8] sm:$0xff] %vm1177_vm8, %v1174_v0 }
0x1744   :  { %1178 = vst.msk [vmem:[#allocation11] sm:$0xff] %vm1177_vm8, %v1169_v13 }
0x1745   :  { %1710 = shalt.err (!%p1707_p10)
}
0x1746   :  { %s1711_s7 = scalar_lea.hbm %s2074_s8, 256 }
0x1747   :  { %p1712_p11 = scmp.ne.s32.totalorder %s2074_s8, %s1711_s7  ;;  %p1715_p12 = scmp.lt.u32.totalorder %s1711_s7, %s2074_s8 }
0x1749   :  { %p1717_p13 = pnand %p1715_p12, %p1712_p11 }
0x174b   :  { %1720 = shalt.err (!%p1717_p13)
}
0x174c   :  { %1191 = dma.vmem_to_hbm [thread:$0]  %s1186_s30, 256, %s2074_s8, [#allocation5], %s1733_s25, %s1733_s25, %s1734_s26  }
0x174d   :  { %1727 = dma.done.wait [#allocation5], 256  }
0x174e   :  { %1728 = vsyncadd [#allocation5], 4294967040 }
0x174f   :  { %1729 = dma.done.wait [#allocation13], 64  }
0x1750   :  { %1730 = vsyncadd [#allocation13], 4294967232 }
0x1751   :  { %1221 = vsyncpa [#allocation4], 1 }
0x1752   :  { %1222 = vsyncpa [#allocation7], 1 }
0x1753   :  { %1223 = vsyncpa [#allocation10], 1 }
0x1754   :  { %1224 = vsyncpa [#allocation5], 1 }
0x1755   :  { %1225 = vsyncpa [#allocation13], 1 }

</bundles_post_ra>
